<compile_context>
chip_gen: v7x
topology: tpu7x:2x2x1
jax: 0.10.0
libtpu: 0.0.40
codegen_flags: <defaults>
</compile_context>

<pallas_src>
import jax
import jax.numpy as jnp
from jax.experimental import pallas as pl
from jax.experimental.pallas import tpu as pltpu

# Below this many input elements, let XLA fuse `x @ w.T + b` directly.
_MIN_PALLAS_ELEMENTS = 64 * 1024
# Up to this D_out, use the VPU (mul + lane-reduce) path instead of the MXU.
_MAX_VPU_DOUT = 8


def _linear_vpu_kernel(x_ref, w_ref, b_ref, o_ref):
    """Small-D_out path: VPU multiply + XLU lane reduce, lane-dense output.

    x_ref: [Bb, D_in]    (VMEM)
    w_ref: [D_out, D_in] (VMEM, native nn.Linear layout)
    b_ref: [D_out]       (SMEM scalars, 1-D to avoid 2-D SMEM padding)
    o_ref: [D_out, Bb]   (VMEM) -- batch on the lane axis => unmasked lane-dense
                          stores + contiguous writeback (vs. masked vst.msk for
                          a 1-lane-wide (Bb, 1) output).
    """
    x = x_ref[...].astype(jnp.float32)                 # [Bb, D_in]
    w = w_ref[...].astype(jnp.float32)                 # [D_out, D_in]
    for j in range(o_ref.shape[0]):                    # static unroll, D_out <= 8
        acc = jnp.sum(x * w[j][None, :], axis=-1)      # VPU mul + XLU lane reduce -> [Bb]
        o_ref[j, :] = (acc + b_ref[j]).astype(o_ref.dtype)


def _linear_mxu_kernel(x_ref, wt_ref, b_ref, o_ref):
    """General D_out path (D_out > 8): MXU matmul against the pre-transposed
    weight [D_in, D_out] (transposed once in the wrapper, outside the grid loop,
    so no per-grid-step in-kernel transpose of the weight operand).

    x_ref: [Bb, D_in], wt_ref: [D_in, D_out], b_ref: [1, D_out], o_ref: [Bb, D_out]
    """
    acc = jnp.dot(x_ref[...], wt_ref[...], preferred_element_type=jnp.float32)
    o_ref[...] = (acc + b_ref[...]).astype(o_ref.dtype)


def _pick_block_b(B, block_b):
    """Batch-tile size.

    - B <= 256: single full-array tile (full-dim blocks are exempt from (8,128)).
    - B  > 256: lane-dense output puts batch on lanes, so tiles must be multiples
      of 128; force >= 2 grid steps so the "parallel" axis can shard across
      v7x's two TensorCores; cap at `block_b` (default 2048) to amortize the
      ~0.35us per-step overhead while staying tiny in VMEM on every generation.
    """
    if B <= 256:
        return int(B)
    half = pl.cdiv(B, 2)                       # v7x: at least 2 grid steps
    tile = 128 * pl.cdiv(half, 128)            # lane-dense => multiple of 128
    cap = max(128, (block_b // 128) * 128)
    return int(min(cap, tile))


def linear_forward(x, weight, bias, *, block_b=2048, force_pallas=False):
    """x: [B, D_in], weight: [D_out, D_in] (PyTorch layout), bias: [D_out] -> [B, D_out]"""
    B, D_in = x.shape
    D_out, D_in_w = weight.shape
    assert D_in == D_in_w, (D_in, D_in_w)
    assert bias.shape == (D_out,), bias.shape

    # Dispatch rule: at tiny sizes (the module's 8x28x1 template, ~450 FLOPs)
    # the fastest "kernel" is no kernel -- let XLA fuse matmul + bias add.
    if not force_pallas and B * D_in < _MIN_PALLAS_ELEMENTS:
        return x @ weight.T + bias

    bb = _pick_block_b(B, block_b)
    grid = (pl.cdiv(B, bb),)

    itemsize = jnp.dtype(x.dtype).itemsize
    cost = pl.CostEstimate(
        flops=2 * B * D_in * D_out,
        transcendentals=0,
        bytes_accessed=(x.size + weight.size + bias.size + B * D_out) * itemsize,
    )
    cparams = pltpu.CompilerParams(dimension_semantics=("parallel",))

    if D_out <= _MAX_VPU_DOUT:
        # TODO(synk): if the upstream producer can emit x as [D_in, B] (batch on
        # lanes), switch to a sublane-reduce kernel to avoid the 28->128 lane
        # padding of the x tile; a standalone wrapper transpose of x would cost
        # a full read+write pass, so it is not done here.
        out_t = pl.pallas_call(
            _linear_vpu_kernel,
            out_shape=jax.ShapeDtypeStruct((D_out, B), x.dtype),      # lane-dense slab
            grid=grid,
            in_specs=[
                pl.BlockSpec((bb, D_in), lambda i: (i, 0)),
                pl.BlockSpec((D_out, D_in), lambda i: (0, 0)),
                pl.BlockSpec(memory_space=pltpu.MemorySpace.SMEM),    # 1-D scalar bias
            ],
            out_specs=pl.BlockSpec((D_out, bb), lambda i: (0, i)),
            compiler_params=cparams,
            cost_estimate=cost,
        )(x, weight, bias)
        # Tiny (D_out x B) transpose back to the module's [B, D_out] convention;
        # for D_out == 1 this is effectively a reshape.
        return out_t.T

    # Wider outputs: MXU path. Transpose the tiny, grid-invariant weight ONCE
    # here instead of risking a per-grid-step in-kernel transpose.
    w_t = weight.T                      # [D_in, D_out]
    b2 = bias.reshape(1, D_out)
    return pl.pallas_call(
        _linear_mxu_kernel,
        out_shape=jax.ShapeDtypeStruct((B, D_out), x.dtype),
        grid=grid,
        in_specs=[
            pl.BlockSpec((bb, D_in), lambda i: (i, 0)),
            pl.BlockSpec((D_in, D_out), lambda i: (0, 0)),
            pl.BlockSpec((1, D_out), lambda i: (0, 0)),
        ],
        out_specs=pl.BlockSpec((bb, D_out), lambda i: (i, 0)),
        compiler_params=cparams,
        cost_estimate=cost,
    )(x, w_t, b2)


if __name__ == "__main__":
    # Shapes implied by the module's construction in torch_basic.py:
    #   input_dim = 28 (last dim of the 28x28 input), output_dim = 1
    batch, input_dim, output_dim = 8, 28, 1

    key = jax.random.PRNGKey(0)
    kx, kw, kb = jax.random.split(key, 3)

    # Deterministic parameter init mimicking nn.Linear's U(-1/sqrt(in), 1/sqrt(in))
    bound = 1.0 / (input_dim ** 0.5)
    weight = jax.random.uniform(kw, (output_dim, input_dim), jnp.float32,
                                minval=-bound, maxval=bound)
    bias = jax.random.uniform(kb, (output_dim,), jnp.float32,
                              minval=-bound, maxval=bound)
    x = jax.random.uniform(kx, (batch, input_dim), jnp.float32)
    ref = x @ weight.T + bias

    # 1) Dispatcher at the template shape: routes to plain XLA fusion (by design).
    out_xla = jax.block_until_ready(linear_forward(x, weight, bias))
    assert out_xla.shape == (batch, output_dim)
    assert jnp.allclose(out_xla, ref, atol=1e-5, rtol=1e-5)

    # 2) Pallas VPU kernel (lane-dense output), forced at the small template shape.
    out_pl = jax.block_until_ready(linear_forward(x, weight, bias, force_pallas=True))
    assert out_pl.shape == (batch, output_dim)
    assert jnp.allclose(out_pl, ref, atol=1e-5, rtol=1e-5)

    # 3) Small-D_out VPU path + multi-step grid (exercises the v7x 2-tile split
    #    and a partial last tile: B=384 -> tiles of 256 + 128).
    b2_batch, d_out2 = 384, 4
    kx2, kw2, kb2 = jax.random.split(kb, 3)
    x2 = jax.random.uniform(kx2, (b2_batch, input_dim), jnp.float32)
    w2 = jax.random.uniform(kw2, (d_out2, input_dim), jnp.float32,
                            minval=-bound, maxval=bound)
    bb2 = jax.random.uniform(kb2, (d_out2,), jnp.float32, minval=-bound, maxval=bound)
    out2 = jax.block_until_ready(linear_forward(x2, w2, bb2, force_pallas=True))
    ref2 = x2 @ w2.T + bb2
    assert out2.shape == (b2_batch, d_out2)
    assert jnp.allclose(out2, ref2, atol=1e-5, rtol=1e-5)

    # 4) MXU path sanity check (D_out > 8, pre-transposed weight).
    d_out3 = 16
    kw3, kb3 = jax.random.split(kx2, 2)
    w3 = jax.random.uniform(kw3, (d_out3, input_dim), jnp.float32,
                            minval=-bound, maxval=bound)
    bb3 = jax.random.uniform(kb3, (d_out3,), jnp.float32, minval=-bound, maxval=bound)
    out3 = jax.block_until_ready(linear_forward(x, w3, bb3, force_pallas=True))
    ref3 = x @ w3.T + bb3
    assert out3.shape == (batch, d_out3)
    assert jnp.allclose(out3, ref3, atol=1e-5, rtol=1e-5)

    print("KERNEL_OK")
</pallas_src>

<mosaic_0001>
module attributes {stable_mosaic.version = 11 : i64} {
  func.func @_linear_vpu_kernel(%arg0: i32, %arg1: memref<8x28xf32, #tpu.memory_space<vmem>>, %arg2: memref<1x28xf32, #tpu.memory_space<vmem>>, %arg3: memref<1xf32, #tpu.memory_space<smem>>, %arg4: memref<1x8xf32, #tpu.memory_space<vmem>>) attributes {dimension_semantics = [#tpu.dimension_semantics<parallel>], iteration_bounds = array<i64: 1>, scalar_prefetch = 0 : i64, scratch_operands = 0 : i64, tpu.core_type = #tpu.core_type<tc>, window_params = [{transform_indices = @transform_0, window_bounds = array<i64: 8, 28>}, {pipeline_mode = #tpu.pipeline_mode<synchronous>, transform_indices = @transform_1, window_bounds = array<i64: 1, 28>}, {transform_indices = @transform_2, window_bounds = array<i64: 1>}, {transform_indices = @transform_3, window_bounds = array<i64: 1, 8>}]} {
    %c0 = arith.constant 0 : index
    %c0_0 = arith.constant 0 : index
    %0 = vector.load %arg1[%c0, %c0_0] : memref<8x28xf32, #tpu.memory_space<vmem>>, vector<8x28xf32>
    %c0_1 = arith.constant 0 : index
    %c0_2 = arith.constant 0 : index
    %1 = vector.load %arg2[%c0_1, %c0_2] : memref<1x28xf32, #tpu.memory_space<vmem>>, vector<1x28xf32>
    %2 = vector.shape_cast %1 : vector<1x28xf32> to vector<28xf32>
    %3 = vector.shape_cast %2 : vector<28xf32> to vector<1x28xf32>
    %4 = vector.broadcast %3 : vector<1x28xf32> to vector<8x28xf32>
    %5 = arith.mulf %0, %4 : vector<8x28xf32>
    %cst = arith.constant dense<0.000000e+00> : vector<8xf32>
    %6 = vector.multi_reduction <add>, %5, %cst [1] : vector<8x28xf32> to vector<8xf32>
    %c0_3 = arith.constant 0 : index
    %7 = memref.load %arg3[%c0_3] : memref<1xf32, #tpu.memory_space<smem>>
    %8 = vector.broadcast %7 : f32 to vector<8xf32>
    %9 = arith.addf %6, %8 : vector<8xf32>
    %c0_4 = arith.constant 0 : index
    %c0_5 = arith.constant 0 : index
    %10 = vector.load %arg4[%c0_4, %c0_5] : memref<1x8xf32, #tpu.memory_space<vmem>>, vector<1x8xf32>
    %11 = vector.shape_cast %10 : vector<1x8xf32> to vector<8xf32>
    %12 = vector.shape_cast %9 : vector<8xf32> to vector<1x8xf32>
    tpu.vector_store %arg4[%c0_4, %c0_5], %12 {strides = array<i32>} : memref<1x8xf32, #tpu.memory_space<vmem>>, vector<1x8xf32>,
    return
  }
  func.func @transform_0(%arg0: i32) -> (i32, i32) {
    %c0_i32 = arith.constant 0 : i32
    %c0_i32_0 = arith.constant 0 : i32
    return %arg0, %c0_i32 : i32, i32
  }
  func.func @transform_1(%arg0: i32) -> (i32, i32) {
    %c0_i32 = arith.constant 0 : i32
    %c0_i32_0 = arith.constant 0 : i32
    %c0_i32_1 = arith.constant 0 : i32
    return %c0_i32, %c0_i32_0 : i32, i32
  }
  func.func @transform_2(%arg0: i32) -> i32 {
    %c0_i32 = arith.constant 0 : i32
    %c0_i32_0 = arith.constant 0 : i32
    return %c0_i32 : i32
  }
  func.func @transform_3(%arg0: i32) -> (i32, i32) {
    %c0_i32 = arith.constant 0 : i32
    %c0_i32_0 = arith.constant 0 : i32
    return %c0_i32, %arg0 : i32, i32
  }
}

</mosaic_0001>

<bundles_post_ra>
// kernel: tpu_custom_call.1
= control target key start
LH: loop header
LB: loop body
LE: loop exit
PB: predicated region body
PF: predicated region fallthrough
CT: control target
= control target key end

     0   :  { %9 = vsyncpa [#allocation4], 0  ;;  %s172_s0 = inlined_call_operand.hbm [shape: f32[8,28], index: 0, kind: input, shape index: {}]   ;;  %s173_s1 = inlined_call_operand.vmem [shape: f32[1,28], index: 1, kind: input, shape index: {}]   ;;  %s174_s2 = inlined_call_operand.<no memory space> [shape: f32[1], index: 2, kind: input, shape index: {}]   ;;  %s175_s3 = inlined_call_operand.hbm [shape: f32[1,8], index: 3, kind: output, shape index: {}]  }
   0x1   :  { %10 = vsyncpa [#allocation5], 0  ;;  %s120_s12 = smov [#allocation3]   ;;  %s72_s16 = scalar_lea.hbm %s172_s0, 128 }
   0x2   :  { %s17_s13 = sshll.u32 %s120_s12, 4  ;;  %p73_p0 = scmp.ne.s32.totalorder %s172_s0, %s72_s16  ;;  %s18_s13 = int_to_ptr.vmem [resolvable:$true] %s17_s13 }
   0x3   :  { %p76_p1 = scmp.lt.u32.totalorder %s72_s16, %s172_s0 }
   0x5   :  { %p78_p2 = pnand %p76_p1, %p73_p0 }
   0x7   :  { %81 = shalt.err (!%p78_p2)
}
   0x8   :  { %s82_s21 = scalar_lea.vmem %s18_s13, 128  ;;  %p87_p4 = scmp.lt.s32.totalorder %s18_s13, %s18_s13 }
   0x9   :  { %p83_p3 = scmp.ne.s32.totalorder %s18_s13, %s82_s21  ;;  %p88_p5 = scmp.lt.s32.totalorder %s82_s21, %s82_s21 }
   0xb   :  { %p89_p6 = por %p88_p5, %p87_p4 }
   0xd   :  { %p90_p7 = pnand %p89_p6, %p83_p3 }
   0xf   :  { %93 = shalt.err (!%p90_p7)
}
  0x10   :  { %20 = dma.hbm_to_vmem [thread:$0]  %s172_s0, 128, %s18_s13, [#allocation4]  }
  0x11   :  { %116 = dma.done.wait [#allocation4], 128  }
  0x12   :  { %117 = vsyncadd [#allocation4], 4294967168  ;;  %v28_v0 = vld [vmem:[#allocation3] sm:$0xff]  ;;  %vm37_vm0 = vcmask 228352   ;;  %v45_v4 = vlaneseq  ;;  %v42_v7 = vstv %s174_s2  ;;  %s121_s0 = smov [#allocation6]   ;;  %vm52_vm1 = vcmask 57344  }
  0x13   :  { %v69_v1 = vld [vmem:[%s173_s1] ss:$0 sm:$0xff]  ;;  %s60_s28 = sshll.u32 %s121_s0, 4  ;;  %s61_s28 = int_to_ptr.vmem [resolvable:$true] %s60_s28 }
  0x14   :  { %v36_v2 = vmul.f32 %v69_v1, %v28_v0  ;;  %v46_v5 = vand.u32 127, %v45_v4  ;;  %v48_v6 = vshrl.u32 %v45_v4, 7  ;;  %s94_s1 = scalar_lea.vmem %s61_s28, 16  ;;  %s98_s29 = scalar_lea.vmem %s61_s28, 32 }
  0x15   :  { %p95_p8 = scmp.ne.s32.totalorder %s61_s28, %s94_s1  ;;  %p99_p9 = scmp.lt.s32.totalorder %s61_s28, %s61_s28 }
  0x16   :  { %v38_v3 = vsel %vm37_vm0, %v36_v2, 0.0  ;;  %v49_v8 = vsub.s32 %v46_v5, %v48_v6  ;;  %p100_p10 = scmp.lt.s32.totalorder %s98_s29, %s94_s1 }
  0x17   :  { %39 = vadd.xlane.f32.xlu0 %v38_v3 }
  0x18   :  { %p101_p11 = por %p100_p10, %p99_p9 }
  0x1a   :  { %p102_p12 = pnand %p101_p11, %p95_p8 }
  0xa4   :  { %v40_v9 = vpop.xlane.xlu0 %39 }
  0xa5   :  { %v43_v10 = vadd.f32 %v42_v7, %v40_v9 }
  0xa7   :  { %v50_v11 = vrot.slane %v43_v10, %v49_v8 }
  0xa9   :  { %53 = vst.msk [vmem:[#allocation6] sm:$0x1] %vm52_vm1, %v50_v11 }
  0xaa   :  { %105 = shalt.err (!%p102_p12)
}
  0xab   :  { %s106_s2 = scalar_lea.hbm %s175_s3, 16 }
  0xac   :  { %p107_p13 = scmp.ne.s32.totalorder %s175_s3, %s106_s2  ;;  %p110_p0 = scmp.lt.u32.totalorder %s106_s2, %s175_s3 }
  0xae   :  { %p112_p1 = pnand %p110_p0, %p107_p13 }
  0xb0   :  { %115 = shalt.err (!%p112_p1)
}
  0xb1   :  { %63 = dma.vmem_to_hbm [thread:$0]  %s61_s28, 16, %s175_s3, [#allocation5]  }
  0xb2   :  { %118 = dma.done.wait [#allocation5], 16  }
  0xb3   :  { %119 = vsyncadd [#allocation5], 4294967280 }
  0xb4   :  { %67 = vsyncpa [#allocation4], 1 }
  0xb5   :  { %68 = vsyncpa [#allocation5], 1 }

</bundles_post_ra>
